<compile_context>
chip_gen: v7x
topology: tpu7x:2x2x1
jax: 0.10.0
libtpu: 0.0.40
codegen_flags: <defaults>
</compile_context>

<pallas_src>
import functools

import jax
import jax.numpy as jnp
from jax.experimental import pallas as pl
from jax.experimental.pallas import tpu as pltpu

D_FEAT = 3072                    # 4 * 768 (concat of last 4 wav2vec2 layers)
H1, H2, H3 = 512, 256, 128       # classifier hidden sizes (fixed by module)
C_PAD = 128                      # logits padded to a full lane tile
ML_LANES = 128                   # lane-padded (m, l) partial block
_B1_OFF, _B2_OFF, _B3_OFF, _B4_OFF = 0, H1, H1 + H2, H1 + H2 + H3
BIAS_LEN = H1 + H2 + H3 + C_PAD  # 1024 (all offsets are multiples of 128)


def _pool_kernel(T_true, nT_per, x_ref, attw_ref, p_out_ref, ml_out_ref,
                 m_acc, l_acc, p_acc):
    """One (batch, time-split, time-tile) grid step of online-softmax
    attention pooling.  Emits (m, l, p) partials at the split's last tile."""
    s_idx = pl.program_id(1)
    t = pl.program_id(2)
    tT = x_ref.shape[0]

    @pl.when(t == 0)
    def _init():
        m_acc[...] = jnp.full_like(m_acc, -1e30)
        l_acc[...] = jnp.zeros_like(l_acc)
        p_acc[...] = jnp.zeros_like(p_acc)

    x = x_ref[...]                                            # [tT, D] bf16

    # Attention logits on the MXU: [1, D] contract [tT, D] -> [1, tT] (f32).
    s = jax.lax.dot_general(attw_ref[...], x,
                            (((1,), (1,)), ((), ())),
                            preferred_element_type=jnp.float32)

    # Mask padded time columns so their softmax weight becomes 0.
    col = (jax.lax.broadcasted_iota(jnp.int32, (1, tT), 1)
           + (s_idx * nT_per + t) * tT)
    s = jnp.where(col < T_true, s, -1e30)

    # Online softmax over the time axis (all f32).
    m_prev = m_acc[...]
    m_new = jnp.maximum(m_prev, jnp.max(s, axis=-1, keepdims=True))   # [1, 1]
    alpha = jnp.exp(m_prev - m_new)
    p = jnp.exp(s - m_new)                                            # [1, tT]
    l_acc[...] = alpha * l_acc[...] + jnp.sum(p, axis=-1, keepdims=True)
    # Weighted feature sum on the MXU: bf16 [1, tT] @ bf16 [tT, D] -> f32 [1, D]
    p_acc[...] = alpha * p_acc[...] + jnp.dot(p.astype(x.dtype), x,
                                              preferred_element_type=jnp.float32)
    m_acc[...] = m_new

    @pl.when(t == pl.num_programs(2) - 1)
    def _store():
        p_out_ref[...] = p_acc[...]
        lane = jax.lax.broadcasted_iota(jnp.int32, (1, ML_LANES), 1)
        ml_out_ref[...] = jnp.where(lane == 0, m_acc[...],
                                    jnp.where(lane == 1, l_acc[...], 0.0))


def _mlp_kernel(p_ref, ml_ref, w1_ref, w2_ref, w3_ref, w4_ref, bias_ref, o_ref):
    """Per-batch-row epilogue: merge the time-split softmax partials
    (log-sum-exp combine) and run the classifier MLP."""
    ml = ml_ref[...]                                     # [S, 1, 128] f32
    m = ml[:, :, 0:1]                                    # [S, 1, 1]
    l = ml[:, :, 1:2]                                    # [S, 1, 1]
    m_tot = jnp.max(m, axis=0, keepdims=True)            # [1, 1, 1]
    scale = jnp.exp(m - m_tot)                           # [S, 1, 1]
    l_tot = jnp.sum(scale * l, axis=0)                   # [1, 1]
    p_tot = jnp.sum(scale * p_ref[...], axis=0)          # [1, D]
    pooled = p_tot * pl.reciprocal(l_tot, approx=True)   # [1, D] f32

    bias = bias_ref[...]                                 # [1, 1024] f32
    b1 = bias[:, _B1_OFF:_B2_OFF]
    b2 = bias[:, _B2_OFF:_B3_OFF]
    b3 = bias[:, _B3_OFF:_B4_OFF]
    b4 = bias[:, _B4_OFF:BIAS_LEN]
    bf16 = jnp.bfloat16
    # Linear(3072,512) + BatchNorm(folded) + ReLU   (Dropout = identity)
    h = jnp.maximum(jnp.dot(pooled.astype(bf16), w1_ref[...],
                            preferred_element_type=jnp.float32) + b1, 0.0)
    # Linear(512,256) + BatchNorm(folded) + ReLU
    h = jnp.maximum(jnp.dot(h.astype(bf16), w2_ref[...],
                            preferred_element_type=jnp.float32) + b2, 0.0)
    # Linear(256,128) + ReLU
    h = jnp.maximum(jnp.dot(h.astype(bf16), w3_ref[...],
                            preferred_element_type=jnp.float32) + b3, 0.0)
    # Linear(128, num_classes) -> lane-padded [1, 128] logits
    o_ref[...] = (jnp.dot(h.astype(bf16), w4_ref[...],
                          preferred_element_type=jnp.float32) + b4
                  ).astype(o_ref.dtype)


def _round_up(x, m):
    return (x + m - 1) // m * m


def audio_model_head(features, kparams, num_classes, *,
                     time_tile=1024, time_splits=None,
                     vmem_limit_bytes=48 * 1024 * 1024):
    """features: [B, T, 3072] (bf16 preferred) -> logits [B, num_classes] f32.

    time_tile: rows of the streamed feature tile (rounded to a multiple of 16
      for bf16 sublane packing).  At the default 1024 the double-buffered bf16
      tile is 2 x 6 MiB, comfortable on every generation including v7x
      (64 MiB VMEM).  v5e/v6e (128 MiB) can raise it further, but the kernel
      is HBM-bandwidth-bound so gains beyond 1024 are small.
    time_splits: number of independent time-reduction partials per batch row
      (merged in the epilogue kernel).  Defaults to 2 when B == 1 so
      single-clip inference uses both v7x TensorCores, else 1.
    """
    B, T, D = features.shape
    assert D == D_FEAT and D % 128 == 0
    assert num_classes <= C_PAD
    attw, w1, w2, w3, w4, bias = kparams

    if features.dtype != jnp.bfloat16:
        # Producers (the wav2vec2 last-4-layer concat) should emit bf16
        # directly so the dominant HBM stream is half width; this cast is a
        # compatibility fallback (it costs an extra HBM pass).
        features = features.astype(jnp.bfloat16)

    n_split = time_splits if time_splits is not None else (2 if B == 1 else 1)
    tT = _round_up(min(time_tile, T), 16)          # multiple of 16 (bf16 packing)
    nT_per = pl.cdiv(pl.cdiv(T, n_split), tT)      # time tiles per split
    T_pad = n_split * nT_per * tT
    if T_pad != T:
        features = jnp.pad(features, ((0, 0), (0, T_pad - T), (0, 0)))

    pool = functools.partial(_pool_kernel, T, nT_per)
    p_part, ml_part = pl.pallas_call(
        pool,
        out_shape=(jax.ShapeDtypeStruct((B, n_split, 1, D), jnp.float32),
                   jax.ShapeDtypeStruct((B, n_split, 1, ML_LANES), jnp.float32)),
        grid=(B, n_split, nT_per),
        in_specs=[
            # streamed bf16 feature tiles
            pl.BlockSpec((None, tT, D), lambda b, s, t: (b, s * nT_per + t, 0)),
            # attention weight row (grid-invariant, 6 KiB)
            pl.BlockSpec((1, D), lambda b, s, t: (0, 0)),
        ],
        out_specs=(
            pl.BlockSpec((None, None, 1, D), lambda b, s, t: (b, s, 0, 0)),
            pl.BlockSpec((None, None, 1, ML_LANES), lambda b, s, t: (b, s, 0, 0)),
        ),
        scratch_shapes=[
            pltpu.VMEM((1, 1), jnp.float32),    # running max
            pltpu.VMEM((1, 1), jnp.float32),    # running sum(exp)
            pltpu.VMEM((1, D), jnp.float32),    # pooled accumulator
        ],
        compiler_params=pltpu.CompilerParams(
            dimension_semantics=("parallel", "parallel", "arbitrary"),
            vmem_limit_bytes=vmem_limit_bytes),
    )(features, attw)

    out = pl.pallas_call(
        _mlp_kernel,
        out_shape=jax.ShapeDtypeStruct((B, 1, C_PAD), jnp.float32),
        grid=(B,),
        in_specs=[
            pl.BlockSpec((None, n_split, 1, D), lambda b: (b, 0, 0, 0)),
            pl.BlockSpec((None, n_split, 1, ML_LANES), lambda b: (b, 0, 0, 0)),
            pl.BlockSpec((D, H1), lambda b: (0, 0)),        # w1 (bf16, BN folded)
            pl.BlockSpec((H1, H2), lambda b: (0, 0)),       # w2 (bf16, BN folded)
            pl.BlockSpec((H2, H3), lambda b: (0, 0)),       # w3 (bf16)
            pl.BlockSpec((H3, C_PAD), lambda b: (0, 0)),    # w4 (bf16, lane padded)
            pl.BlockSpec((1, BIAS_LEN), lambda b: (0, 0)),  # packed biases (f32)
        ],
        out_specs=pl.BlockSpec((None, 1, C_PAD), lambda b: (b, 0, 0)),
        compiler_params=pltpu.CompilerParams(
            dimension_semantics=("parallel",),
            vmem_limit_bytes=vmem_limit_bytes),
    )(p_part, ml_part, w1, w2, w3, w4, bias)
    return out[:, 0, :num_classes]


def init_torch_like_params(key, num_classes, D=D_FEAT):
    """Deterministic parameters mirroring the PyTorch module's head."""
    def linear(k, fan_in, fan_out):
        kw, kb = jax.random.split(k)
        bound = 1.0 / jnp.sqrt(jnp.float32(fan_in))
        W = jax.random.uniform(kw, (fan_in, fan_out), jnp.float32, -bound, bound)
        b = jax.random.uniform(kb, (fan_out,), jnp.float32, -bound, bound)
        return W, b

    def batchnorm(k, n):   # eval-mode gamma/beta + non-trivial running stats
        kg, kb, km, kv = jax.random.split(k, 4)
        gamma = 1.0 + 0.1 * jax.random.normal(kg, (n,), jnp.float32)
        beta = 0.1 * jax.random.normal(kb, (n,), jnp.float32)
        mean = 0.1 * jax.random.normal(km, (n,), jnp.float32)
        var = jnp.abs(1.0 + 0.1 * jax.random.normal(kv, (n,), jnp.float32))
        return gamma, beta, mean, var

    ks = jax.random.split(key, 7)
    wa, ba = linear(ks[0], D, 1)                  # AttentionPooling: Linear(3072, 1)
    w1, b1 = linear(ks[1], D, H1)
    w2, b2 = linear(ks[2], H1, H2)
    w3, b3 = linear(ks[3], H2, H3)
    w4, b4 = linear(ks[4], H3, num_classes)
    return dict(attw=wa[:, 0], attb=ba, w1=w1, b1=b1, bn1=batchnorm(ks[5], H1),
                w2=w2, b2=b2, bn2=batchnorm(ks[6], H2),
                w3=w3, b3=b3, w4=w4, b4=b4)


def prepare_kernel_params(p, num_classes, D=D_FEAT, eps=1e-5):
    """Fold BatchNorm into the Linears, pack biases, pad + cast for the kernel.

    The attention bias `attb` is deliberately dropped: softmax is invariant to
    a constant shift of the logits, so it cannot affect the output.
    """
    def fold_bn(w, b, bn):
        gamma, beta, mean, var = bn
        s = gamma / jnp.sqrt(var + eps)
        return w * s[None, :], (b - mean) * s + beta

    w1f, b1f = fold_bn(p['w1'], p['b1'], p['bn1'])
    w2f, b2f = fold_bn(p['w2'], p['b2'], p['bn2'])
    w4p = jnp.zeros((H3, C_PAD), jnp.float32).at[:, :num_classes].set(p['w4'])
    b4p = jnp.zeros((C_PAD,), jnp.float32).at[:num_classes].set(p['b4'])

    attw = p['attw'].reshape(1, D).astype(jnp.bfloat16)
    bias_pack = jnp.concatenate([b1f, b2f, p['b3'], b4p]).reshape(1, BIAS_LEN)
    bf16 = jnp.bfloat16
    return (attw, w1f.astype(bf16), w2f.astype(bf16),
            p['w3'].astype(bf16), w4p.astype(bf16),
            bias_pack.astype(jnp.float32))


def reference_head(features, kparams, num_classes):
    """Pure-JAX reference using the same (folded, bf16) kernel parameters."""
    attw, w1, w2, w3, w4, bias = kparams
    x = features.astype(jnp.float32)
    aw = attw.astype(jnp.float32)[0]
    hi = jax.lax.Precision.HIGHEST
    scores = jnp.einsum('btd,d->bt', x, aw, precision=hi)
    wts = jax.nn.softmax(scores, axis=1)
    pooled = jnp.einsum('bt,btd->bd', wts, x, precision=hi)
    b1 = bias[:, _B1_OFF:_B2_OFF]
    b2 = bias[:, _B2_OFF:_B3_OFF]
    b3 = bias[:, _B3_OFF:_B4_OFF]
    b4 = bias[:, _B4_OFF:BIAS_LEN]
    bf16 = jnp.bfloat16
    h = jnp.maximum(jnp.dot(pooled.astype(bf16), w1,
                            preferred_element_type=jnp.float32) + b1, 0.0)
    h = jnp.maximum(jnp.dot(h.astype(bf16), w2,
                            preferred_element_type=jnp.float32) + b2, 0.0)
    h = jnp.maximum(jnp.dot(h.astype(bf16), w3,
                            preferred_element_type=jnp.float32) + b3, 0.0)
    logits = jnp.dot(h.astype(bf16), w4,
                     preferred_element_type=jnp.float32) + b4
    return logits[:, :num_classes]


if __name__ == "__main__":
    num_classes = 10
    key = jax.random.PRNGKey(0)
    k1, k2, k3, kp = jax.random.split(key, 4)

    params = init_torch_like_params(kp, num_classes, D_FEAT)
    kparams = prepare_kernel_params(params, num_classes, D_FEAT)

    # Synthetic bf16 stand-ins for the concatenated wav2vec2 last-4-layer
    # features (emitted bf16 at the source, per the perf review).
    def run_case(k, B, T, **kw):
        feats = jax.random.normal(k, (B, T, D_FEAT), jnp.float32).astype(jnp.bfloat16)
        out = jax.block_until_ready(audio_model_head(feats, kparams, num_classes, **kw))
        ref = reference_head(feats, kparams, num_classes)
        assert out.shape == (B, num_classes)
        err = float(jnp.max(jnp.abs(out - ref)))
        # Tolerance covers bf16 feature/softmax-weight rounding + approx recip.
        assert jnp.allclose(out, ref, rtol=2e-2, atol=2e-2), err

    run_case(k1, 2, 8)                   # batch-parallel, single time tile
    run_case(k2, 1, 50, time_tile=16)    # B=1: time split + multi-tile + padding
    run_case(k3, 1, 5)                   # B=1 edge: one split is pure padding
    print("KERNEL_OK")
</pallas_src>

<mosaic_0001>
module attributes {stable_mosaic.version = 11 : i64} {
  func.func @_pool_kernel(%arg0: i32, %arg1: i32, %arg2: i32, %arg3: memref<1x16x3072xbf16, #tpu.memory_space<vmem>>, %arg4: memref<1x3072xbf16, #tpu.memory_space<vmem>>, %arg5: memref<1x1x1x3072xf32, #tpu.memory_space<vmem>>, %arg6: memref<1x1x1x128xf32, #tpu.memory_space<vmem>>, %arg7: memref<1x1xf32, #tpu.memory_space<vmem>>, %arg8: memref<1x1xf32, #tpu.memory_space<vmem>>, %arg9: memref<1x3072xf32, #tpu.memory_space<vmem>>) attributes {dimension_semantics = [#tpu.dimension_semantics<parallel>, #tpu.dimension_semantics<parallel>, #tpu.dimension_semantics<arbitrary>], iteration_bounds = array<i64: 2, 1, 1>, scalar_prefetch = 0 : i64, scratch_operands = 3 : i64, tpu.core_type = #tpu.core_type<tc>, window_params = [{transform_indices = @transform_0, window_bounds = array<i64: 1, 16, 3072>}, {pipeline_mode = #tpu.pipeline_mode<synchronous>, transform_indices = @transform_1, window_bounds = array<i64: 1, 3072>}, {transform_indices = @transform_2, window_bounds = array<i64: 1, 1, 1, 3072>}, {transform_indices = @transform_3, window_bounds = array<i64: 1, 1, 1, 128>}]} {
    %c0_i32 = arith.constant 0 : i32
    %0 = arith.cmpi eq, %arg2, %c0_i32 : i32
    %1 = arith.extui %0 : i1 to i32
    %c0_i32_0 = arith.constant 0 : i32
    %2 = arith.cmpi ne, %1, %c0_i32_0 : i32
    scf.if %2 {
      %cst_23 = arith.constant -1.000000e+30 : f32
      %43 = vector.broadcast %cst_23 : f32 to vector<1x1xf32>
      %c0_24 = arith.constant 0 : index
      %c0_25 = arith.constant 0 : index
      %44 = vector.load %arg7[%c0_24, %c0_25] : memref<1x1xf32, #tpu.memory_space<vmem>>, vector<1x1xf32>
      tpu.vector_store %arg7[%c0_24, %c0_25], %43 {strides = array<i32>} : memref<1x1xf32, #tpu.memory_space<vmem>>, vector<1x1xf32>,
      %cst_26 = arith.constant 0.000000e+00 : f32
      %45 = vector.broadcast %cst_26 : f32 to vector<1x1xf32>
      %c0_27 = arith.constant 0 : index
      %c0_28 = arith.constant 0 : index
      %46 = vector.load %arg8[%c0_27, %c0_28] : memref<1x1xf32, #tpu.memory_space<vmem>>, vector<1x1xf32>
      tpu.vector_store %arg8[%c0_27, %c0_28], %45 {strides = array<i32>} : memref<1x1xf32, #tpu.memory_space<vmem>>, vector<1x1xf32>,
      %cst_29 = arith.constant 0.000000e+00 : f32
      %47 = vector.broadcast %cst_29 : f32 to vector<1x3072xf32>
      %c0_30 = arith.constant 0 : index
      %c0_31 = arith.constant 0 : index
      %48 = vector.load %arg9[%c0_30, %c0_31] : memref<1x3072xf32, #tpu.memory_space<vmem>>, vector<1x3072xf32>
      tpu.vector_store %arg9[%c0_30, %c0_31], %47 {strides = array<i32>} : memref<1x3072xf32, #tpu.memory_space<vmem>>, vector<1x3072xf32>,
    } else {
    }
    %c0 = arith.constant 0 : index
    %c0_1 = arith.constant 0 : index
    %c0_2 = arith.constant 0 : index
    %3 = vector.load %arg3[%c0, %c0_1, %c0_2] : memref<1x16x3072xbf16, #tpu.memory_space<vmem>>, vector<1x16x3072xbf16>
    %4 = vector.shape_cast %3 : vector<1x16x3072xbf16> to vector<16x3072xbf16>
    %c0_3 = arith.constant 0 : index
    %c0_4 = arith.constant 0 : index
    %5 = vector.load %arg4[%c0_3, %c0_4] : memref<1x3072xbf16, #tpu.memory_space<vmem>>, vector<1x3072xbf16>
    %cst = arith.constant dense<0.000000e+00> : vector<1x16xf32>
    %6 = tpu.matmul %5, %4, %cst {dimension_numbers = #tpu.dot_dimension_numbers<[1], [1], [0], [0], [0, 0, 1, 0], [], []>} : vector<1x3072xbf16>, vector<16x3072xbf16>, vector<1x16xf32> -> vector<1x16xf32>
    %7 = tpu.iota {dimensions = array<i32: 1>} : vector<1x16xi32>
    %c1_i32 = arith.constant 1 : i32
    %8 = arith.muli %arg1, %c1_i32 : i32
    %9 = arith.addi %8, %arg2 : i32
    %c16_i32 = arith.constant 16 : i32
    %10 = arith.muli %9, %c16_i32 : i32
    %11 = vector.broadcast %10 : i32 to vector<1x16xi32>
    %12 = arith.addi %7, %11 : vector<1x16xi32>
    %c8_i32 = arith.constant 8 : i32
    %13 = vector.broadcast %c8_i32 : i32 to vector<1x16xi32>
    %14 = arith.cmpi slt, %12, %13 : vector<1x16xi32>
    %cst_5 = arith.constant -1.000000e+30 : f32
    %15 = vector.broadcast %cst_5 : f32 to vector<1x16xf32>
    %16 = arith.select %14, %6, %15 : vector<1x16xi1>, vector<1x16xf32>
    %c0_6 = arith.constant 0 : index
    %c0_7 = arith.constant 0 : index
    %17 = vector.load %arg7[%c0_6, %c0_7] : memref<1x1xf32, #tpu.memory_space<vmem>>, vector<1x1xf32>
    %cst_8 = arith.constant dense<0xFF800000> : vector<1xf32>
    %18 = vector.multi_reduction <maximumf>, %16, %cst_8 [1] : vector<1x16xf32> to vector<1xf32>
    %19 = vector.shape_cast %18 : vector<1xf32> to vector<1x1xf32>
    %20 = arith.maximumf %17, %19 : vector<1x1xf32>
    %21 = arith.subf %17, %20 : vector<1x1xf32>
    %22 = math.exp %21 : vector<1x1xf32>
    %23 = vector.broadcast %20 : vector<1x1xf32> to vector<1x16xf32>
    %24 = arith.subf %16, %23 : vector<1x16xf32>
    %25 = math.exp %24 : vector<1x16xf32>
    %c0_9 = arith.constant 0 : index
    %c0_10 = arith.constant 0 : index
    %26 = vector.load %arg8[%c0_9, %c0_10] : memref<1x1xf32, #tpu.memory_space<vmem>>, vector<1x1xf32>
    %27 = arith.mulf %22, %26 : vector<1x1xf32>
    %cst_11 = arith.constant dense<0.000000e+00> : vector<1xf32>
    %28 = vector.multi_reduction <add>, %25, %cst_11 [1] : vector<1x16xf32> to vector<1xf32>
    %29 = vector.shape_cast %28 : vector<1xf32> to vector<1x1xf32>
    %30 = arith.addf %27, %29 : vector<1x1xf32>
    %c0_12 = arith.constant 0 : index
    %c0_13 = arith.constant 0 : index
    %31 = vector.load %arg8[%c0_12, %c0_13] : memref<1x1xf32, #tpu.memory_space<vmem>>, vector<1x1xf32>
    tpu.vector_store %arg8[%c0_12, %c0_13], %30 {strides = array<i32>} : memref<1x1xf32, #tpu.memory_space<vmem>>, vector<1x1xf32>,
    %c0_14 = arith.constant 0 : index
    %c0_15 = arith.constant 0 : index
    %32 = vector.load %arg9[%c0_14, %c0_15] : memref<1x3072xf32, #tpu.memory_space<vmem>>, vector<1x3072xf32>
    %33 = vector.broadcast %22 : vector<1x1xf32> to vector<1x3072xf32>
    %34 = arith.mulf %33, %32 : vector<1x3072xf32>
    %35 = arith.truncf %25 : vector<1x16xf32> to vector<1x16xbf16>
    %cst_16 = arith.constant dense<0.000000e+00> : vector<1x3072xf32>
    %36 = tpu.matmul %35, %4, %cst_16 {dimension_numbers = #tpu.dot_dimension_numbers<[1], [0], [0], [1], [0, 0, 1, 1], [], []>} : vector<1x16xbf16>, vector<16x3072xbf16>, vector<1x3072xf32> -> vector<1x3072xf32>
    %37 = arith.addf %34, %36 : vector<1x3072xf32>
    %c0_17 = arith.constant 0 : index
    %c0_18 = arith.constant 0 : index
    %38 = vector.load %arg9[%c0_17, %c0_18] : memref<1x3072xf32, #tpu.memory_space<vmem>>, vector<1x3072xf32>
    tpu.vector_store %arg9[%c0_17, %c0_18], %37 {strides = array<i32>} : memref<1x3072xf32, #tpu.memory_space<vmem>>, vector<1x3072xf32>,
    %c0_19 = arith.constant 0 : index
    %c0_20 = arith.constant 0 : index
    %39 = vector.load %arg7[%c0_19, %c0_20] : memref<1x1xf32, #tpu.memory_space<vmem>>, vector<1x1xf32>
    tpu.vector_store %arg7[%c0_19, %c0_20], %20 {strides = array<i32>} : memref<1x1xf32, #tpu.memory_space<vmem>>, vector<1x1xf32>,
    %c0_i32_21 = arith.constant 0 : i32
    %40 = arith.cmpi eq, %arg2, %c0_i32_21 : i32
    %41 = arith.extui %40 : i1 to i32
    %c0_i32_22 = arith.constant 0 : i32
    %42 = arith.cmpi ne, %41, %c0_i32_22 : i32
    scf.if %42 {
      %c0_23 = arith.constant 0 : index
      %c0_24 = arith.constant 0 : index
      %43 = vector.load %arg9[%c0_23, %c0_24] : memref<1x3072xf32, #tpu.memory_space<vmem>>, vector<1x3072xf32>
      %c0_25 = arith.constant 0 : index
      %c0_26 = arith.constant 0 : index
      %c0_27 = arith.constant 0 : index
      %c0_28 = arith.constant 0 : index
      %44 = vector.load %arg5[%c0_25, %c0_26, %c0_27, %c0_28] : memref<1x1x1x3072xf32, #tpu.memory_space<vmem>>, vector<1x1x1x3072xf32>
      %45 = vector.shape_cast %44 : vector<1x1x1x3072xf32> to vector<1x3072xf32>
      %46 = vector.shape_cast %43 : vector<1x3072xf32> to vector<1x1x1x3072xf32>
      tpu.vector_store %arg5[%c0_25, %c0_26, %c0_27, %c0_28], %46 {strides = array<i32>} : memref<1x1x1x3072xf32, #tpu.memory_space<vmem>>, vector<1x1x1x3072xf32>,
      %47 = tpu.iota {dimensions = array<i32: 1>} : vector<1x128xi32>
      %c0_i32_29 = arith.constant 0 : i32
      %48 = vector.broadcast %c0_i32_29 : i32 to vector<1x128xi32>
      %49 = arith.cmpi eq, %47, %48 : vector<1x128xi32>
      %c0_30 = arith.constant 0 : index
      %c0_31 = arith.constant 0 : index
      %50 = vector.load %arg7[%c0_30, %c0_31] : memref<1x1xf32, #tpu.memory_space<vmem>>, vector<1x1xf32>
      %c1_i32_32 = arith.constant 1 : i32
      %51 = vector.broadcast %c1_i32_32 : i32 to vector<1x128xi32>
      %52 = arith.cmpi eq, %47, %51 : vector<1x128xi32>
      %c0_33 = arith.constant 0 : index
      %c0_34 = arith.constant 0 : index
      %53 = vector.load %arg8[%c0_33, %c0_34] : memref<1x1xf32, #tpu.memory_space<vmem>>, vector<1x1xf32>
      %cst_35 = arith.constant 0.000000e+00 : f32
      %54 = vector.shape_cast %53 : vector<1x1xf32> to vector<1x1xf32>
      %55 = vector.broadcast %54 : vector<1x1xf32> to vector<1x128xf32>
      %56 = vector.broadcast %cst_35 : f32 to vector<1x128xf32>
      %57 = arith.select %52, %55, %56 : vector<1x128xi1>, vector<1x128xf32>
      %58 = vector.shape_cast %50 : vector<1x1xf32> to vector<1x1xf32>
      %59 = vector.broadcast %58 : vector<1x1xf32> to vector<1x128xf32>
      %60 = arith.select %49, %59, %57 : vector<1x128xi1>, vector<1x128xf32>
      %c0_36 = arith.constant 0 : index
      %c0_37 = arith.constant 0 : index
      %c0_38 = arith.constant 0 : index
      %c0_39 = arith.constant 0 : index
      %61 = vector.load %arg6[%c0_36, %c0_37, %c0_38, %c0_39] : memref<1x1x1x128xf32, #tpu.memory_space<vmem>>, vector<1x1x1x128xf32>
      %62 = vector.shape_cast %61 : vector<1x1x1x128xf32> to vector<1x128xf32>
      %63 = vector.shape_cast %60 : vector<1x128xf32> to vector<1x1x1x128xf32>
      tpu.vector_store %arg6[%c0_36, %c0_37, %c0_38, %c0_39], %63 {strides = array<i32>} : memref<1x1x1x128xf32, #tpu.memory_space<vmem>>, vector<1x1x1x128xf32>,
    } else {
    }
    return
  }
  func.func @transform_0(%arg0: i32, %arg1: i32, %arg2: i32) -> (i32, i32, i32) {
    %c1_i32 = arith.constant 1 : i32
    %0 = arith.muli %arg1, %c1_i32 : i32
    %1 = arith.addi %0, %arg2 : i32
    %c0_i32 = arith.constant 0 : i32
    %c0_i32_0 = arith.constant 0 : i32
    return %arg0, %1, %c0_i32 : i32, i32, i32
  }
  func.func @transform_1(%arg0: i32, %arg1: i32, %arg2: i32) -> (i32, i32) {
    %c0_i32 = arith.constant 0 : i32
    %c0_i32_0 = arith.constant 0 : i32
    %c0_i32_1 = arith.constant 0 : i32
    return %c0_i32, %c0_i32_0 : i32, i32
  }
  func.func @transform_2(%arg0: i32, %arg1: i32, %arg2: i32) -> (i32, i32, i32, i32) {
    %c0_i32 = arith.constant 0 : i32
    %c0_i32_0 = arith.constant 0 : i32
    %c0_i32_1 = arith.constant 0 : i32
    return %arg0, %arg1, %c0_i32, %c0_i32_0 : i32, i32, i32, i32
  }
  func.func @transform_3(%arg0: i32, %arg1: i32, %arg2: i32) -> (i32, i32, i32, i32) {
    %c0_i32 = arith.constant 0 : i32
    %c0_i32_0 = arith.constant 0 : i32
    %c0_i32_1 = arith.constant 0 : i32
    return %arg0, %arg1, %c0_i32, %c0_i32_0 : i32, i32, i32, i32
  }
}

</mosaic_0001>

<bundles_post_ra>
// kernel: tpu_custom_call.1
= control target key start
LH: loop header
LB: loop body
LE: loop exit
PB: predicated region body
PF: predicated region fallthrough
CT: control target
= control target key end

     0   :  { %9 = vsyncpa [#allocation6], 0  ;;  %s2840_s0 = inlined_call_operand.hbm [shape: bf16[2,16,3072], index: 0, kind: input, shape index: {}]   ;;  %s2841_s1 = inlined_call_operand.hbm [shape: bf16[1,3072], index: 1, kind: input, shape index: {}]   ;;  %s2842_s2 = inlined_call_operand.hbm [shape: f32[2,1,1,3072], index: 2, kind: output, shape index: {0}]   ;;  %s2843_s3 = inlined_call_operand.hbm [shape: f32[2,1,1,128], index: 3, kind: output, shape index: {1}]  }
   0x1   :  { %11 = vsyncpa [#allocation6 + $0x1], 0 }
   0x2   :  { %12 = vsyncpa [#allocation9], 0 }
   0x3   :  { %13 = vsyncpa [#allocation7], 0 }
   0x4   :  { %15 = vsyncpa [#allocation7 + $0x1], 0 }
   0x5   :  { %16 = vsyncpa [#allocation12], 0 }
   0x6   :  { %18 = vsyncpa [#allocation12 + $0x1], 0  ;;  %s2381_s12 = smov 0   ;;  %s2383_s13 = smov 0  }
   0x7   :  { %s2385_s14 = smov 0   ;;  %s2387_s15 = smov 0  }
   0x8   :  { %s2389_s16 = smov 0   ;;  %s2391_s17 = smov 0  }
   0x9 LB: > { %s1983_s18 = sadd.s32 4294967295, %s2349_s17   ;;  %s1984_s19 = sadd.s32 4294967294, %s2349_s17   ;;  %s2349_s17 = sphi %s2391_s17, %s24_s17   ;;  %s2345_s16 = sphi %s2389_s16, %s2871_s16   ;;  %s2341_s15 = sphi %s2387_s15, %s2870_s15   ;;  %s2337_s14 = sphi %s2385_s14, %s2869_s14   ;;  %s2333_s13 = sphi %s2383_s13, %s2868_s13   ;;  %s2329_s12 = sphi %s2381_s12, %s2867_s12  }
   0xa   : > { %s54_s20 = sadd.s32 1, %s2337_s14  ;;  %p61_p0 = scmp.ne.s32.totalorder %s2337_s14, %s2333_s13 }
   0xb   : > { %p62_p1 = scmp.eq.s32.totalorder %s2349_s17, 0  ;;  %p67_p2 = scmp.ne.s32.totalorder %s2333_s13, %s2329_s12 }
   0xc   : > { %p2419_p3 = scmp.eq.s32.totalorder %s1983_s18, 0  ;;  %p114_p4 = scmp.eq.s32.totalorder %s1983_s18, 1 }
   0xd   : > { %p2423_p5 = por %p62_p1, %p61_p0  ;;  %p120_p6 = scmp.eq.s32.totalorder %s1984_s19, 1 }
   0xe   : > { %s2850_s21 = scalar_select %p2419_p3, 1, 0 }
   0xf   : > { %p2429_p7 = por %p2419_p3, %p67_p2  ;;  %p2433_p8 = por %p114_p4, %p61_p0 }
  0x10   : > { %p2437_p9 = por %p120_p6, %p67_p2  ;;  %p1985_p10 = scmp.ge.s32.totalorder %s2349_s17, 1 }
  0x11   : > { %s2852_s23 = scalar_select %p2429_p7, 1, 0 }
  0x12   : > { %s2853_s24 = scalar_select %p2433_p8, 1, 0 }
  0x13   : > { %s2854_s25 = scalar_select %p2437_p9, 1, 0 }
  0x14   : > { %p155_p11 = scmp.lt.s32.totalorder %s2349_s17, 3  ;;  %s2351_s27 = smov [#allocation8]  }
  0x15   : > { %s168_s28 = sshll.u32 %s2351_s27, 4  ;;  %p2106_p1 = scmp.lt.s32.totalorder %s2349_s17, 2  ;;  %s169_s28 = int_to_ptr.vmem [resolvable:$true] %s168_s28 }
  0x16   : > { %p2444_p13 = pnand %p1985_p10, %p155_p11  ;;  %s43_s4 = sadd.s32 1, %s2345_s16 }
  0x17   : > { %p2453_p4 = pnand %p2106_p1, %p2423_p5  ;;  %p2464_p6 = scmp.ge.s32.totalorder %s43_s4, 2 }
  0x18   : > { %s2855_s26 = scalar_select %p2444_p13, 1, 0 }
  0x19   : > { %p2090_p0 = pneg %p2444_p13  ;;  %s179_s6 = sand.u32 1, %s2337_s14  }
  0x1a   : > { %s2856_s29 = scalar_select %p2453_p4, 1, 0 }
  0x1b   : > { %p2459_p2 = pnand %p2090_p0, %p2419_p3  ;;  %s2173_s9 = scalar_lea.hbm %s2841_s1, 384 }
  0x1c   : > { %s2858_s5 = scalar_select %p2464_p6, 1, 0 }
  0x1d   : > { %p2174_p5 = scmp.ne.s32.totalorder %s2841_s1, %s2173_s9  ;;  %p2175_p10 = pneg %p2459_p2 }
  0x1e   : > { %p2180_p0 = scmp.lt.u32.totalorder %s2173_s9, %s2841_s1 }
  0x1f   : > { %p2176_p11 = pnand %p2175_p10, %p2174_p5 }
  0x21   : > { %p2177_p1 = pneg %p2176_p11 }
  0x23   : > { %p2182_p12 = pnand %p2180_p0, %p2177_p1 }
  0x25   : > { %2185 = shalt.err (!%p2182_p12)
}
  0x26   : > { %s2186_s22 = scalar_lea.vmem %s169_s28, 384  ;;  %p2194_p7 = scmp.lt.s32.totalorder %s169_s28, %s169_s28 }
  0x27   : > { %p2187_p9 = scmp.ne.s32.totalorder %s169_s28, %s2186_s22  ;;  %p2195_p13 = scmp.lt.s32.totalorder %s2186_s22, %s2186_s22 }
  0x29   : > { %p2189_p8 = pnand %p2187_p9, %p2175_p10  ;;  %p2196_p4 = por %p2195_p13, %p2194_p7 }
  0x2b   : > { %p2190_p3 = pneg %p2189_p8 }
  0x2d   : > { %p2197_p6 = pnand %p2196_p4, %p2190_p3 }
  0x2f   : > { %2200 = shalt.err (!%p2197_p6)
}
  0x30   : > { %2093 = dma.hbm_to_vmem [thread:$0]  (!%p2459_p2), %s2841_s1, 384, %s169_s28, [#allocation9]  }
  0x31   : > { %p2859_p9 = scmp.ne.s32.totalorder %s2858_s5, 0  ;;  %s2075_s8 = smul.u32 192, %s179_s6 }
  0x32   : > { %s2076_s10 = smul.u32 3072, %s2345_s16  ;;  %s2504_s5 = scalar_lea.sflag [#allocation6], %s179_s6 }
  0x33   : > { %s2873_s4 = smov (%p2859_p9, %s43_s4), 0  ;;  %s183_s19 = scalar_lea.vmem [#allocation5], %s2075_s8 }
  0x34   : > { %s49_s9 = ssub.s32 %s2345_s16, %s2873_s4  ;;  %s2495_s18 = scalar_lea.hbm %s2840_s0, %s2076_s10 }
  0x35   : > { %p52_p3 = scmp.eq.s32.totalorder %s49_s9, 0  ;;  %s194_s22 = sshll.u32 %s183_s19, 4  ;;  %s2502_s22 = int_to_ptr.vmem [resolvable:$true] %s194_s22 }
  0x36   : > { %s2201_s27 = scalar_lea.hbm %s2495_s18, 3072  ;;  %p2860_p8 = scmp.ne.s32.totalorder %s2856_s29, 0 }
  0x37   : > { %s2500_s28 = scalar_select %p52_p3, %s2337_s14, %s54_s20  }
  0x38   : > { %p2202_p7 = scmp.ne.s32.totalorder %s2495_s18, %s2201_s27  ;;  %p2203_p12 = pneg %p2860_p8 }
  0x39   : > { %s2206_s8 = scalar_lea.hbm %s2840_s0, 6144  ;;  %p2207_p2 = scmp.lt.u32.totalorder %s2495_s18, %s2840_s0 }
  0x3a   : > { %p2204_p13 = pnand %p2203_p12, %p2202_p7  ;;  %p2208_p6 = scmp.lt.u32.totalorder %s2206_s8, %s2201_s27 }
  0x3b   : > { %p2210_p10 = scmp.lt.u32.totalorder %s2201_s27, %s2495_s18 }
  0x3c   : > { %p2205_p4 = pneg %p2204_p13  ;;  %p2209_p5 = por %p2208_p6, %p2207_p2 }
  0x3e   : > { %p2211_p11 = por %p2210_p10, %p2209_p5 }
  0x40   : > { %p2212_p1 = pnand %p2211_p11, %p2205_p4 }
  0x42   : > { %2215 = shalt.err (!%p2212_p1)
}
  0x43   : > { %s2216_s20 = scalar_lea.vmem %s2502_s22, 3072  ;;  %s2352_s6 = smov [#allocation5]  }
  0x44   : > { %p2217_p0 = scmp.ne.s32.totalorder %s2502_s22, %s2216_s20  ;;  %s2221_s11 = sshll.u32 %s2352_s6, 4  ;;  %s2222_s11 = int_to_ptr.vmem [resolvable:$false] %s2221_s11 }
  0x45   : > { %s2223_s19 = scalar_lea.vmem %s2222_s11, 6144  ;;  %p2224_p7 = scmp.lt.s32.totalorder %s2502_s22, %s2222_s11 }
  0x46   : > { %p2219_p9 = pnand %p2217_p0, %p2203_p12  ;;  %p2225_p13 = scmp.lt.s32.totalorder %s2223_s19, %s2216_s20 }
  0x48   : > { %p2220_p3 = pneg %p2219_p9  ;;  %p2226_p2 = por %p2225_p13, %p2224_p7 }
  0x4a   : > { %p2227_p6 = pnand %p2226_p2, %p2220_p3 }
  0x4c   : > { %2230 = shalt.err (!%p2227_p6)
}
  0x4d   : > { %s2353_s27 = smov 1536   ;;  %s2354_s7 = smov 96  }
  0x4e   : > { %2097 = dma.hbm_to_vmem [thread:$0]  (!%p2860_p8), %s2495_s18, 3072, %s2502_s22, %s2504_s5, %s2353_s27, %s2353_s27, %s2354_s7  }
  0x4f   : > { %p2861_p12 = scmp.ne.s32.totalorder %s2855_s26, 0 }
  0x50   : > { %s2535_s9 = sand.u32 (!%p2861_p12), 1, %s2333_s13   ;;  %p2862_p4 = scmp.ne.s32.totalorder (!%p2861_p12), %s2852_s23, 0 }
  0x51   : > { %206 = sbr.rel (%p2861_p12) target bundleno = 1075 (0x433), region = 28  ;;  %s209_s10 = scalar_lea.sflag (!%p2861_p12), [#allocation6], %s2535_s9 }
  0x52   : > { %s2077_s8 = smul.u32 (!%p2861_p12), 192, %s2535_s9 }
  0x54   : > { %s2539_s30 = scalar_lea.vmem (!%p2861_p12), [#allocation5], %s2077_s8 }
  0x58   : > { %2312 = dma.done.wait (%p2862_p4), %s209_s10, 3072  }
  0x59   : > { %2314 = vsyncadd (%p2862_p4), %s209_s10, 4294964224  ;;  %p2863_p8 = scmp.ne.s32.totalorder %s2850_s21, 0 }
  0x5b   : > { %2316 = dma.done.wait (%p2863_p8), [#allocation9], 384  }
  0x5c   : > { %2318 = vsyncadd (%p2863_p8), [#allocation9], 4294966912  ;;  %v290_v0 = vlaneseq  ;;  %v2355_v1 = vmov 1966171168   ;;  %v256_v6 = vld [vmem:[%s2539_s30] sm:$0xff]  ;;  %v257_v12 = vld [vmem:[%s2539_s30 + $0x8] sm:$0xff] }
  0x5d   : > { %v288_v2 = vunpack.c.l.s4 %v2355_v1  ;;  %v268_v7 = vld [vmem:[%s2539_s30 + $0x60] sm:$0xff]  ;;  %v269_v13 = vld [vmem:[%s2539_s30 + $0x68] sm:$0xff]  ;;  %v258_v17 = vld [vmem:[%s2539_s30 + $0x10] sm:$0xff]  ;;  %vm250_vm0 = vcmask 0   ;;  %vm1066_vm2 = vcmask 122880   ;;  %vm1110_vm3 = vcmask 130048  }
  0x5e   : > { %v2550_v3 = vshrl.u32 %v290_v0, 7  ;;  %v280_v8 = vld [vmem:[#allocation8] sm:$0xff]  ;;  %v1992_v9 = vcombine.high %v256_v6, %v268_v7  ;;  %v1991_v10 = vcombine.low %v256_v6, %v268_v7  ;;  %v1994_v14 = vcombine.high %v257_v12, %v269_v13  ;;  %v270_v18 = vld [vmem:[%s2539_s30 + $0x70] sm:$0xff]  ;;  %v259_v26 = vld [vmem:[%s2539_s30 + $0x18] sm:$0xff]  ;;  %s2078_s21 = smul.u32 24, %s2535_s9  ;;  %s2028_s26 = sshll.u32 %s2341_s15, 4 }
  0x5f   : > { %v289_v4 = vunpack.c.0.s8 %v288_v2  ;;  %v286_v20 = vcombine.high %v280_v8, %v280_v8  ;;  %v2564_v22 = vcombine.low %v257_v12, %v269_v13  ;;  %v2566_v23 = vcombine.high %v258_v17, %v270_v18  ;;  %v271_v27 = vld [vmem:[%s2539_s30 + $0x78] sm:$0xff]  ;;  %v260_v32 = vld [vmem:[%s2539_s30 + $0x20] sm:$0xff]  ;;  %v281_v38 = vld [vmem:[#allocation8 + $0x8] sm:$0xff]  ;;  %s242_s29 = scalar_lea.vmem [#allocation11], %s2535_s9  ;;  %s2752_s20 = scalar_lea.hbm %s2843_s3, %s2028_s26 }
  0x60   : > { %577 = vmatprep.subr.bf16.mxu0 %v1992_v9  ;;  %1114 = vmatprep.subr.bf16.mxu1 %v1992_v9  ;;  %v2573_v29 = vcombine.low %v258_v17, %v270_v18  ;;  %v2576_v31 = vcombine.high %v259_v26, %v271_v27  ;;  %v272_v33 = vld [vmem:[%s2539_s30 + $0x80] sm:$0xff]  ;;  %v2583_v35 = vcombine.low %v259_v26, %v271_v27  ;;  %v261_v41 = vld [vmem:[%s2539_s30 + $0x28] sm:$0xff]  ;;  %v262_v47 = vld [vmem:[%s2539_s30 + $0x30] sm:$0xff]  ;;  %s2732_s23 = scalar_lea.vmem [#allocation10], %s2078_s21  ;;  %s1856_s18 = sshll.u32 %s242_s29, 4  ;;  %s2754_s18 = int_to_ptr.vmem [resolvable:$true] %s1856_s18 }
  0x61   : > { %v2553_v5 = vsub.s32 %v289_v4, %v2550_v3  ;;  %578 = vmatpush1.bf16.xpose.msra.mxu0 %v1991_v10  ;;  %1115 = vmatpush1.bf16.msra.mxu1 %v1991_v10  ;;  %v2585_v37 = vcombine.high %v260_v32, %v272_v33  ;;  %v273_v42 = vld [vmem:[%s2539_s30 + $0x88] sm:$0xff]  ;;  %v2592_v44 = vcombine.low %v260_v32, %v272_v33  ;;  %v274_v48 = vld [vmem:[%s2539_s30 + $0x90] sm:$0xff]  ;;  %v263_v56 = vld [vmem:[%s2539_s30 + $0x38] sm:$0xff]  ;;  %s1827_s6 = scalar_lea.sflag [#allocation12], %s2535_s9  ;;  %s2231_s11 = scalar_lea.vmem %s2754_s18, 16 }
  0x62   : > { %617 = vmatprep.subr.bf16.mxu0 %v1994_v14  ;;  %1155 = vmatprep.subr.bf16.mxu1 %v1994_v14  ;;  %v2595_v46 = vcombine.high %v261_v41, %v273_v42  ;;  %v2602_v50 = vcombine.low %v261_v41, %v273_v42  ;;  %v335_v52 = vcombine.high %v281_v38, %v281_v38  ;;  %v275_v57 = vld [vmem:[%s2539_s30 + $0x98] sm:$0xff]  ;;  %v264_v62 = vld [vmem:[%s2539_s30 + $0x40] sm:$0xff]  ;;  %v282_v7 = vld [vmem:[#allocation8 + $0x10] sm:$0xff]  ;;  %v2356_v41 = vmov -1e+30   ;;  %p2232_p5 = scmp.ne.s32.totalorder %s2754_s18, %s2231_s11  ;;  %p2864_p10 = scmp.ne.s32.totalorder %s2853_s24, 0 }
  0x63   : > { %v293_v11 = vrot.slane %v280_v8, %v2553_v5  ;;  %v300_v24 = vrot.slane %v286_v20, %v2553_v5  ;;  %v342_v39 = vrot.slane %v281_v38, %v2553_v5  ;;  %v2604_v53 = vcombine.high %v262_v47, %v274_v48  ;;  %v276_v63 = vld [vmem:[%s2539_s30 + $0xa0] sm:$0xff]  ;;  %v265_v10 = vld [vmem:[%s2539_s30 + $0x48] sm:$0xff]  ;;  %v278_v17 = vld [vmem:[%s2539_s30 + $0xb0] sm:$0xff]  ;;  %251 = vst.msk [vmem:[#allocation2] sm:$0x1] %vm250_vm0, %v2356_v41  ;;  %s2359_s19 = smov [#allocation11]  }
  0x64   : > { %v349_v54 = vrot.slane %v335_v52, %v2553_v5  ;;  %v2611_v59 = vcombine.low %v262_v47, %v274_v48  ;;  %v2614_v61 = vcombine.high %v263_v56, %v275_v57  ;;  %v2621_v2 = vcombine.low %v263_v56, %v275_v57  ;;  %v267_v27 = vld [vmem:[%s2539_s30 + $0x58] sm:$0xff]  ;;  %p2233_p11 = pnand %p2232_p5, %p2864_p10  ;;  %s2235_s27 = sshll.u32 %s2359_s19, 4  ;;  %s2236_s27 = int_to_ptr.vmem [resolvable:$false] %s2235_s27 }
  0x65   : > { %v301_v15 = vcombine.high %v293_v11, %v293_v11  ;;  %v309_v19 = vrot.slane %v293_v11, %v2553_v5  ;;  %v302_v25 = vcombine.high %v300_v24, %v300_v24  ;;  %v316_v34 = vrot.slane %v300_v24, %v2553_v5  ;;  %v277_v11 = vld [vmem:[%s2539_s30 + $0xa8] sm:$0xff]  ;;  %s2237_s7 = scalar_lea.vmem %s2236_s27, 32  ;;  %p2238_p0 = scmp.lt.s32.totalorder %s2754_s18, %s2236_s27 }
  0x66   : > { %v350_v40 = vcombine.high %v342_v39, %v342_v39  ;;  %v358_v49 = vrot.slane %v342_v39, %v2553_v5  ;;  %v351_v55 = vcombine.high %v349_v54, %v349_v54  ;;  %v365_v1 = vrot.slane %v349_v54, %v2553_v5  ;;  %p2234_p1 = pneg %p2233_p11  ;;  %p2239_p9 = scmp.lt.s32.totalorder %s2237_s7, %s2231_s11 }
  0x67   : > { %v323_v16 = vrot.slane %v301_v15, %v2553_v5  ;;  %v331_v28 = vcombine.high %v309_v19, %v309_v19  ;;  %v330_v30 = vrot.slane %v302_v25, %v2553_v5  ;;  %v332_v43 = vcombine.high %v316_v34, %v316_v34 }
  0x68   : > { %v372_v45 = vrot.slane %v350_v40, %v2553_v5  ;;  %v380_v58 = vcombine.high %v358_v49, %v358_v49  ;;  %v379_v60 = vrot.slane %v351_v55, %v2553_v5  ;;  %v2623_v6 = vcombine.high %v264_v62, %v276_v63  ;;  %p2240_p3 = por %p2239_p9, %p2238_p0 }
  0x69   : > { %609 = vmatprep.mubr.bf16.mxu0 %v323_v16  ;;  %v333_v21 = vcombine.high %v323_v16, %v323_v16  ;;  %v334_v36 = vcombine.high %v330_v30, %v330_v30  ;;  %v391_v8 = vrot.slane %v282_v7, %v2553_v5  ;;  %v381_v12 = vcombine.high %v365_v1, %v365_v1  ;;  %v266_v16 = vld [vmem:[%s2539_s30 + $0x50] sm:$0xff] }
  0x6a   : > { %610 = vmatmul.mubr.bf16.vlgmr.msra.gmra.mrb[0].mxu0 %v309_v19  ;;  %v382_v51 = vcombine.high %v372_v45, %v372_v45  ;;  %v383_v4 = vcombine.high %v379_v60, %v379_v60  ;;  %v2630_v13 = vcombine.low %v264_v62, %v276_v63  ;;  %v2633_v15 = vcombine.high %v265_v10, %v277_v11  ;;  %v1065_v54 = vld [vmem:[#allocation2] sm:$0x1]  ;;  %p2241_p7 = pnand %p2240_p3, %p2234_p1 }
  0x6b   : > { %618 = vmatpush1.bf16.xpose.msra.mxu0 %v2564_v22  ;;  %649 = vmatprep.mubr.bf16.mxu0 %v333_v21  ;;  %v399_v9 = vcombine.high %v391_v8, %v391_v8  ;;  %v407_v18 = vrot.slane %v391_v8, %v2553_v5  ;;  %v2640_v19 = vcombine.low %v265_v10, %v277_v11  ;;  %v2662_v42 = vand.u32 127, %v290_v0 }
  0x6c   : > { %657 = vmatprep.subr.bf16.mxu0 %v2566_v23  ;;  %v384_v21 = vcombine.high %v282_v7, %v282_v7  ;;  %v2642_v24 = vcombine.high %v266_v16, %v278_v17  ;;  %v2649_v32 = vcombine.low %v266_v16, %v278_v17  ;;  %v2357_v52 = vmov 0  }
  0x6d   : > { %v421_v14 = vrot.slane %v399_v9, %v2553_v5  ;;  %vm1063_vm1 = vcmp.lt.s32.totalorder %v2662_v42, 8  ;;  %2164 = vset.pattern.permute.xlu0 %v2357_v52  ;;  %1146 = vmatprep.mubr.bf16.mxu1 %v2357_v52  ;;  %v2358_v0 = vmov 0.0   ;;  %vm1798_vm4 = vcmp.eq.s32.totalorder %v2662_v42, 1 }
  0x6e   : > { %v398_v25 = vrot.slane %v384_v21, %v2553_v5  ;;  %2165 = vset.pattern.permute.xlu1 %v2357_v52  ;;  %252 = vst.msk [vmem:[#allocation3] sm:$0x1] %vm250_vm0, %v2358_v0  ;;  %vm1796_vm5 = vcmp.eq.s32.totalorder %v2662_v42, 0 }
  0x6f   : > { %v431_v20 = vcombine.high %v421_v14, %v421_v14 }
  0x70   : > { %v400_v26 = vcombine.high %v398_v25, %v398_v25 }
  0x72   : > { %v428_v33 = vrot.slane %v400_v26, %v2553_v5 }
  0x74   : > { %v432_v39 = vcombine.high %v428_v33, %v428_v33 }
  0x76   : > { %650 = vmatmul.mubr.bf16.vlgmr.msra.gmra.mrb[0].mxu0 %v331_v28  ;;  %v279_v28 = vld [vmem:[%s2539_s30 + $0xb8] sm:$0xff] }
  0x77   : > { %658 = vmatpush1.bf16.xpose.msra.mxu0 %v2573_v29  ;;  %689 = vmatprep.mubr.bf16.mxu0 %v330_v30  ;;  %v429_v30 = vcombine.high %v407_v18, %v407_v18  ;;  %v2657_v38 = vcombine.low %v267_v27, %v279_v28 }
  0x78   : > { %697 = vmatprep.subr.bf16.mxu0 %v2576_v31 }
  0x82   : > { %690 = vmatmul.mubr.bf16.vlgmr.msra.gmra.mrb[0].mxu0 %v316_v34  ;;  %v2652_v34 = vcombine.high %v267_v27, %v279_v28 }
  0x83   : > { %698 = vmatpush1.bf16.xpose.msra.mxu0 %v2583_v35  ;;  %729 = vmatprep.mubr.bf16.mxu0 %v334_v36  ;;  %v414_v36 = vrot.slane %v398_v25, %v2553_v5 }
  0x84   : > { %737 = vmatprep.subr.bf16.mxu0 %v2585_v37 }
  0x85   : > { %v430_v40 = vcombine.high %v414_v36, %v414_v36 }
  0x8e   : > { %730 = vmatmul.mubr.bf16.vlgmr.msra.gmra.mrb[0].mxu0 %v332_v43 }
  0x8f   : > { %738 = vmatpush1.bf16.xpose.msra.mxu0 %v2592_v44  ;;  %769 = vmatprep.mubr.bf16.mxu0 %v372_v45 }
  0x90   : > { %777 = vmatprep.subr.bf16.mxu0 %v2595_v46 }
  0x9a   : > { %770 = vmatmul.mubr.bf16.vlgmr.msra.gmra.mrb[0].mxu0 %v358_v49 }
  0x9b   : > { %778 = vmatpush1.bf16.xpose.msra.mxu0 %v2602_v50  ;;  %809 = vmatprep.mubr.bf16.mxu0 %v382_v51 }
  0x9c   : > { %817 = vmatprep.subr.bf16.mxu0 %v2604_v53 }
  0xa6   : > { %810 = vmatmul.mubr.bf16.vlgmr.msra.gmra.mrb[0].mxu0 %v380_v58  ;;  %v2672_v58 = vsub.s32 0, %v2550_v3 }
  0xa7   : > { %818 = vmatpush1.bf16.xpose.msra.mxu0 %v2611_v59  ;;  %849 = vmatprep.mubr.bf16.mxu0 %v379_v60 }
  0xa8   : > { %857 = vmatprep.subr.bf16.mxu0 %v2614_v61 }
  0xb2   : > { %850 = vmatmul.mubr.bf16.vlgmr.msra.gmra.mrb[0].mxu0 %v365_v1 }
  0xb3   : > { %858 = vmatpush1.bf16.xpose.msra.mxu0 %v2621_v2  ;;  %889 = vmatprep.mubr.bf16.mxu0 %v383_v4 }
  0xb4   : > { %897 = vmatprep.subr.bf16.mxu0 %v2623_v6 }
  0xbe   : > { %890 = vmatmul.mubr.bf16.vlgmr.msra.gmra.mrb[0].mxu0 %v381_v12 }
  0xbf   : > { %898 = vmatpush1.bf16.xpose.msra.mxu0 %v2630_v13  ;;  %929 = vmatprep.mubr.bf16.mxu0 %v421_v14 }
  0xc0   : > { %937 = vmatprep.subr.bf16.mxu0 %v2633_v15 }
  0xca   : > { %930 = vmatmul.mubr.bf16.vlgmr.msra.gmra.mrb[0].mxu0 %v407_v18 }
  0xcb   : > { %938 = vmatpush1.bf16.xpose.msra.mxu0 %v2640_v19  ;;  %969 = vmatprep.mubr.bf16.mxu0 %v431_v20 }
  0xcc   : > { %977 = vmatprep.subr.bf16.mxu0 %v2642_v24 }
  0xd6   : > { %970 = vmatmul.mubr.bf16.vlgmr.msra.gmra.mrb[0].mxu0 %v429_v30 }
  0xd7   : > { %978 = vmatpush1.bf16.xpose.msra.mxu0 %v2649_v32  ;;  %1009 = vmatprep.mubr.bf16.mxu0 %v428_v33 }
  0xd8   : > { %1017 = vmatprep.subr.bf16.mxu0 %v2652_v34 }
  0xe2   : > { %1010 = vmatmul.mubr.bf16.vlgmr.msra.gmra.mrb[0].mxu0 %v414_v36 }
  0xe3   : > { %1018 = vmatpush1.bf16.xpose.msra.mxu0 %v2657_v38  ;;  %1049 = vmatprep.mubr.bf16.mxu0 %v432_v39 }
  0xee   : > { %1050 = vmatmul.mubr.bf16.vlgmr.msra.gmra.mrb[0].mxu0 %v430_v40 }
 0x1c1   : > { %v1051_v43 = vpop.f32.mrb[0].mxu0 }
 0x1c2   : > { %v1064_v45 = vsel %vm1063_vm1, %v1051_v43, -1e+30  ;;  %v1053_v47 = vpop.f32.mrb[1].mxu0 }
 0x1c3   : > { %v1054_v48 = vpop.f32.mrb[2].mxu0  ;;  %v1067_v49 = vsel %vm1066_vm2, %v1064_v45, -inf }
 0x1c4   : > { %1068 = vmax.xlane.f32.xlu0 %v1067_v49  ;;  %v1055_v51 = vpop.f32.mrb[3].mxu0 }
 0x251   : > { %v1069_v55 = vpop.xlane.xlu0 %1068 }
 0x252   : > { %v1070_v56 = vmax.f32 %v1065_v54, %v1069_v55 }
 0x254   : > { %v1071_v57 = vsub.f32 %v1065_v54, %v1070_v56  ;;  %1786 = vst.msk [vmem:[#allocation2] sm:$0x1] %vm250_vm0, %v1070_v56  ;;  %1076 = vperm.xlu0 %2164, %v1070_v56  }
 0x256   : > { %v1072_v9 = vmul.f32 1.442695, %v1071_v57 }
 0x2d3   : > { %v1077_v60 = vpop.permute.xlu0 %1076 }
 0x2d4   : > { %v1082_v62 = vrot.slane %v1077_v60, %v2672_v58 }
 0x2d6   : > { %v1083_v63 = vsub.f32 %v1064_v45, %v1082_v62 }
 0x2d8   : > { %v1084_v1 = vmul.f32 1.442695, %v1083_v63 }
 0x2da   : > { %2169 = vpow2.f32 %v1084_v1 }
 0x2db   : > { %2171 = vpow2.f32 %v1072_v9 }
 0x2e4   : > { %v2170_v4 = vpop.eup %2169 }
 0x2e5   : > { %v1109_v7 = vpack.c.bf16 %v2170_v4, %v2170_v4  ;;  %v1088_v8 = vsel %vm1066_vm2, %v2170_v4, 0.0  ;;  %v2172_v3 = vpop.eup %2171 }
 0x2e6   : > { %1089 = vadd.xlane.f32.xlu1 %v1088_v8 }
 0x2e7   : > { %2015 = vmatmul.mubr.msk.bf16.vlgmr.msra.gmra.mrb[0].mxu1 %vm1110_vm3, %v1109_v7 }
 0x2e8   : > { %1156 = vmatpush1.bf16.msra.mxu1 %v2564_v22  ;;  %1187 = vmatprep.mubr.bf16.mxu1 %v2357_v52  ;;  %v1086_v22 = vld [vmem:[#allocation3] sm:$0x1] }
 0x2e9   : > { %1196 = vmatprep.subr.bf16.mxu1 %v2566_v23  ;;  %v1087_v23 = vmul.f32 %v2172_v3, %v1086_v22 }
 0x2ef   : > { %2016 = vmatmul.mubr.msk.bf16.vlgmr.msra.gmra.mrb[4].mxu1 %vm1110_vm3, %v1109_v7 }
 0x2f0   : > { %1197 = vmatpush1.bf16.msra.mxu1 %v2573_v29  ;;  %1228 = vmatprep.mubr.bf16.mxu1 %v2357_v52 }
 0x2f1   : > { %1237 = vmatprep.subr.bf16.mxu1 %v2576_v31 }
 0x2f7   : > { %2017 = vmatmul.mubr.msk.bf16.vlgmr.msra.gmra.mrb[8].mxu1 %vm1110_vm3, %v1109_v7  ;;  %1099 = vperm.xlu1 %2165, %v2172_v3  }
 0x2f8   : > { %1238 = vmatpush1.bf16.msra.mxu1 %v2583_v35  ;;  %1269 = vmatprep.mubr.bf16.mxu1 %v2357_v52 }
 0x2f9   : > { %1278 = vmatprep.subr.bf16.mxu1 %v2585_v37  ;;  %v1797_v37 = vld [vmem:[#allocation2] sm:$0x1] }
 0x2ff   : > { %2018 = vmatmul.mubr.msk.bf16.vlgmr.msra.gmra.mrb[12].mxu1 %vm1110_vm3, %v1109_v7 }
 0x300   : > { %1279 = vmatpush1.bf16.msra.mxu1 %v2592_v44  ;;  %1310 = vmatprep.mubr.bf16.mxu1 %v2357_v52 }
 0x301   : > { %1319 = vmatprep.subr.bf16.mxu1 %v2595_v46 }
 0x307   : > { %2019 = vmatmul.mubr.msk.bf16.vlgmr.msra.gmra.mrb[16].mxu1 %vm1110_vm3, %v1109_v7 }
 0x308   : > { %1320 = vmatpush1.bf16.msra.mxu1 %v2602_v50  ;;  %1351 = vmatprep.mubr.bf16.mxu1 %v2357_v52 }
 0x309   : > { %1360 = vmatprep.subr.bf16.mxu1 %v2604_v53 }
 0x30f   : > { %2020 = vmatmul.mubr.msk.bf16.vlgmr.msra.gmra.mrb[20].mxu1 %vm1110_vm3, %v1109_v7 }
 0x310   : > { %1361 = vmatpush1.bf16.msra.mxu1 %v2611_v59  ;;  %1392 = vmatprep.mubr.bf16.mxu1 %v2357_v52 }
 0x311   : > { %1401 = vmatprep.subr.bf16.mxu1 %v2614_v61 }
 0x317   : > { %2021 = vmatmul.mubr.msk.bf16.vlgmr.msra.gmra.mrb[24].mxu1 %vm1110_vm3, %v1109_v7 }
 0x318   : > { %1402 = vmatpush1.bf16.msra.mxu1 %v2621_v2  ;;  %1433 = vmatprep.mubr.bf16.mxu1 %v2357_v52 }
 0x319   : > { %1442 = vmatprep.subr.bf16.mxu1 %v2623_v6 }
 0x31f   : > { %2022 = vmatmul.mubr.msk.bf16.vlgmr.msra.gmra.mrb[28].mxu1 %vm1110_vm3, %v1109_v7 }
 0x320   : > { %1443 = vmatpush1.bf16.msra.mxu1 %v2630_v13  ;;  %1474 = vmatprep.mubr.bf16.mxu1 %v2357_v52 }
 0x321   : > { %1483 = vmatprep.subr.bf16.mxu1 %v2633_v15 }
 0x327   : > { %2023 = vmatmul.mubr.msk.bf16.vlgmr.msra.gmra.mrb[32].mxu1 %vm1110_vm3, %v1109_v7 }
 0x328   : > { %1484 = vmatpush1.bf16.msra.mxu1 %v2640_v19  ;;  %1515 = vmatprep.mubr.bf16.mxu1 %v2357_v52 }
 0x329   : > { %1524 = vmatprep.subr.bf16.mxu1 %v2642_v24 }
 0x32f   : > { %2024 = vmatmul.mubr.msk.bf16.vlgmr.msra.gmra.mrb[36].mxu1 %vm1110_vm3, %v1109_v7 }
 0x330   : > { %1525 = vmatpush1.bf16.msra.mxu1 %v2649_v32  ;;  %1556 = vmatprep.mubr.bf16.mxu1 %v2357_v52 }
 0x331   : > { %1565 = vmatprep.subr.bf16.mxu1 %v2652_v34 }
 0x337   : > { %2025 = vmatmul.mubr.msk.bf16.vlgmr.msra.gmra.mrb[40].mxu1 %vm1110_vm3, %v1109_v7 }
 0x338   : > { %1566 = vmatpush1.bf16.msra.mxu1 %v2657_v38  ;;  %1597 = vmatprep.mubr.bf16.mxu1 %v2357_v52 }
 0x33f   : > { %2026 = vmatmul.mubr.msk.bf16.vlgmr.msra.gmra.mrb[44].mxu1 %vm1110_vm3, %v1109_v7 }
 0x373   : > { %v1090_v29 = vpop.xlane.xlu1 %1089 }
 0x374   : > { %v1091_v31 = vadd.f32 %v1090_v29, %v1087_v23 }
 0x376   : > { %1093 = vst.msk [vmem:[#allocation3] sm:$0x1] %vm250_vm0, %v1091_v31 }
 0x377   : > { %v1100_v26 = vpop.permute.xlu1 %1099 }
 0x378   : > { %v1105_v32 = vrot.slane %v1100_v26, %v2672_v58 }
 0x37a   : > { %v2729_v40 = vmul.f32 0.0, %v1105_v32 }
 0x37d   : > { %v1799_v35 = vld [vmem:[#allocation3] sm:$0x1] }
 0x37e   : > { %1802 = vperm.xlu1 %2165, %v1799_v35  }
 0x382   : > { %1812 = vperm.xlu1 %2165, %v1797_v37  }
 0x3ba   : > { %v1148_v44 = vpop.f32.mrb[0].mxu1 }
 0x3bb   : > { %v1150_v46 = vpop.f32.mrb[1].mxu1 }
 0x3bc   : > { %v1630_v50 = vcombine.low %v1148_v44, %v1150_v46  ;;  %v1152_v53 = vpop.f32.mrb[2].mxu1 }
 0x3bd   : > { %v1153_v59 = vpop.f32.mrb[3].mxu1 }
 0x3be   : > { %v1640_v12 = vrot.slane %v1630_v50, %v2553_v5 }
 0x3c2   : > { %v1189_v61 = vpop.f32.mrb[4].mxu1 }
 0x3c3   : > { %v1191_v2 = vpop.f32.mrb[5].mxu1 }
 0x3c4   : > { %v1631_v6 = vcombine.low %v1189_v61, %v1191_v2  ;;  %v1193_v10 = vpop.f32.mrb[6].mxu1 }
 0x3c5   : > { %v1194_v11 = vpop.f32.mrb[7].mxu1 }
 0x3c6   : > { %v1647_v13 = vrot.slane %v1631_v6, %v2553_v5 }
 0x3c8   : > { %v1662_v14 = vcombine.low %v1640_v12, %v1647_v13 }
 0x3ca   : > { %v1230_v15 = vpop.f32.mrb[8].mxu1  ;;  %v1670_v34 = vrot.slane %v1662_v14, %v2553_v5 }
 0x3cb   : > { %v1232_v16 = vpop.f32.mrb[9].mxu1 }
 0x3cc   : > { %v1632_v17 = vcombine.low %v1230_v15, %v1232_v16  ;;  %v1234_v18 = vpop.f32.mrb[10].mxu1 }
 0x3cd   : > { %v1235_v19 = vpop.f32.mrb[11].mxu1 }
 0x3ce   : > { %v1654_v28 = vrot.slane %v1632_v17, %v2553_v5 }
 0x3d2   : > { %v1271_v20 = vpop.f32.mrb[12].mxu1 }
 0x3d3   : > { %v1273_v21 = vpop.f32.mrb[13].mxu1 }
 0x3d4   : > { %v1633_v24 = vcombine.low %v1271_v20, %v1273_v21  ;;  %v1275_v25 = vpop.f32.mrb[14].mxu1 }
 0x3d5   : > { %v1276_v27 = vpop.f32.mrb[15].mxu1 }
 0x3d6   : > { %v1661_v30 = vrot.slane %v1633_v24, %v2553_v5 }
 0x3d8   : > { %v1663_v33 = vcombine.low %v1654_v28, %v1661_v30 }
 0x3da   : > { %v1677_v36 = vrot.slane %v1663_v33, %v2553_v5  ;;  %v1312_v38 = vpop.f32.mrb[16].mxu1 }
 0x3db   : > { %v1314_v39 = vpop.f32.mrb[17].mxu1 }
 0x3dc   : > { %v1678_v41 = vcombine.low %v1670_v34, %v1677_v36  ;;  %v1679_v43 = vcombine.low %v1312_v38, %v1314_v39  ;;  %v1316_v45 = vpop.f32.mrb[18].mxu1 }
 0x3dd   : > { %v1317_v47 = vpop.f32.mrb[19].mxu1 }
 0x3de   : > { %v1780_v48 = vadd.f32 %v1678_v41, %v2729_v40  ;;  %v1689_v55 = vrot.slane %v1679_v43, %v2553_v5 }
 0x3e0   : > { %1793 = vst [vmem:[%s2732_s23] sm:$0xff] %v1780_v48 }
 0x3e2   : > { %v1353_v49 = vpop.f32.mrb[20].mxu1 }
 0x3e3   : > { %v1355_v51 = vpop.f32.mrb[21].mxu1 }
 0x3e4   : > { %v1680_v52 = vcombine.low %v1353_v49, %v1355_v51  ;;  %v1357_v0 = vpop.f32.mrb[22].mxu1 }
 0x3e5   : > { %v1358_v54 = vpop.f32.mrb[23].mxu1 }
 0x3e6   : > { %v1696_v56 = vrot.slane %v1680_v52, %v2553_v5 }
 0x3e8   : > { %v1711_v57 = vcombine.low %v1689_v55, %v1696_v56 }
 0x3ea   : > { %v1394_v60 = vpop.f32.mrb[24].mxu1  ;;  %v1719_v35 = vrot.slane %v1711_v57, %v2553_v5 }
 0x3eb   : > { %v1396_v62 = vpop.f32.mrb[25].mxu1 }
 0x3ec   : > { %v1681_v63 = vcombine.low %v1394_v60, %v1396_v62  ;;  %v1398_v1 = vpop.f32.mrb[26].mxu1 }
 0x3ed   : > { %v1399_v4 = vpop.f32.mrb[27].mxu1 }
 0x3ee   : > { %v1703_v23 = vrot.slane %v1681_v63, %v2553_v5 }
 0x3f2   : > { %v1435_v7 = vpop.f32.mrb[28].mxu1 }
 0x3f3   : > { %v1437_v8 = vpop.f32.mrb[29].mxu1 }
 0x3f4   : > { %v1682_v9 = vcombine.low %v1435_v7, %v1437_v8  ;;  %v1439_v3 = vpop.f32.mrb[30].mxu1 }
 0x3f5   : > { %v1440_v22 = vpop.f32.mrb[31].mxu1 }
 0x3f6   : > { %v1710_v29 = vrot.slane %v1682_v9, %v2553_v5 }
 0x3f8   : > { %v1712_v31 = vcombine.low %v1703_v23, %v1710_v29 }
 0x3fa   : > { %v1726_v37 = vrot.slane %v1712_v31, %v2553_v5  ;;  %v1476_v44 = vpop.f32.mrb[32].mxu1 }
 0x3fb   : > { %v1478_v46 = vpop.f32.mrb[33].mxu1 }
 0x3fc   : > { %v1727_v50 = vcombine.low %v1719_v35, %v1726_v37  ;;  %v1728_v53 = vcombine.low %v1476_v44, %v1478_v46  ;;  %v1480_v59 = vpop.f32.mrb[34].mxu1 }
 0x3fd   : > { %v1481_v61 = vpop.f32.mrb[35].mxu1  ;;  %v1803_v2 = vpop.permute.xlu1 %1802 }
 0x3fe   : > { %v1781_v6 = vadd.f32 %v1727_v50, %v2729_v40  ;;  %v1808_v10 = vrot.slane %v1803_v2, %v2672_v58 }
 0x400   : > { %1794 = vst [vmem:[%s2732_s23 + $0x8] sm:$0xff] %v1781_v6  ;;  %v1809_v14 = vsel %vm1798_vm4, %v1808_v10, 0.0 }
 0x401   : > { %v1813_v11 = vpop.permute.xlu1 %1812 }
 0x402   : > { %v1818_v12 = vrot.slane %v1813_v11, %v2672_v58  ;;  %v1517_v13 = vpop.f32.mrb[36].mxu1  ;;  %v1738_v58 = vrot.slane %v1728_v53, %v2553_v5 }
 0x403   : > { %v1519_v15 = vpop.f32.mrb[37].mxu1 }
 0x404   : > { %v1819_v16 = vsel %vm1796_vm5, %v1818_v12, %v1809_v14  ;;  %v1729_v17 = vcombine.low %v1517_v13, %v1519_v15  ;;  %v1521_v42 = vpop.f32.mrb[38].mxu1 }
 0x405   : > { %v1522_v18 = vpop.f32.mrb[39].mxu1  ;;  %1820 = vst [vmem:[%s242_s29] sm:$0x1] %v1819_v16 }
 0x406   : > { %v1745_v19 = vrot.slane %v1729_v17, %v2553_v5 }
 0x407   : > { %2244 = shalt.err (!%p2241_p7)
}
 0x408   : > { %s2245_s8 = scalar_lea.hbm %s2752_s20, 16  ;;  %s2249_s21 = scalar_lea.hbm %s2843_s3, 32 }
 0x409   : > { %p2246_p13 = scmp.ne.s32.totalorder %s2752_s20, %s2245_s8  ;;  %p2250_p12 = scmp.lt.u32.totalorder %s2752_s20, %s2843_s3 }
 0x40a   : > { %p2251_p4 = scmp.lt.u32.totalorder %s2249_s21, %s2245_s8  ;;  %p2253_p5 = scmp.lt.u32.totalorder %s2245_s8, %s2752_s20 }
 0x40b   : > { %p2247_p2 = pnand %p2246_p13, %p2864_p10 }
 0x40c   : > { %p2252_p8 = por %p2251_p4, %p2250_p12 }
 0x40d   : > { %p2248_p6 = pneg %p2247_p2 }
 0x40e   : > { %p2254_p11 = por %p2253_p5, %p2252_p8 }
 0x410   : > { %p2255_p1 = pnand %p2254_p11, %p2248_p6 }
 0x412   : > { %2258 = shalt.err (!%p2255_p1)
}
 0x413   : > { %2087 = dma.vmem_to_hbm [thread:$0]  (%p2864_p10), %s2754_s18, 16, %s2752_s20, %s1827_s6   ;;  %v1760_v20 = vcombine.low %v1738_v58, %v1745_v19  ;;  %v1558_v21 = vpop.f32.mrb[40].mxu1 }
 0x414   : > { %v1560_v24 = vpop.f32.mrb[41].mxu1  ;;  %s2079_s18 = smul.u32 384, %s2341_s15  ;;  %s1842_s22 = sshll.u32 %s2732_s23, 4  ;;  %s2792_s22 = int_to_ptr.vmem [resolvable:$true] %s1842_s22 }
 0x415   : > { %v1730_v25 = vcombine.low %v1558_v21, %v1560_v24  ;;  %v1562_v26 = vpop.f32.mrb[42].mxu1  ;;  %v1768_v41 = vrot.slane %v1760_v20, %v2553_v5  ;;  %s1822_s11 = scalar_lea.sflag [#allocation7], %s2535_s9  ;;  %s2259_s19 = scalar_lea.vmem %s2792_s22, 384 }
 0x416   : > { %v1563_v27 = vpop.f32.mrb[43].mxu1  ;;  %s2790_s6 = scalar_lea.hbm %s2842_s2, %s2079_s18  ;;  %p2260_p0 = scmp.ne.s32.totalorder %s2792_s22, %s2259_s19 }
 0x417   : > { %v1599_v28 = vpop.f32.mrb[44].mxu1  ;;  %v1752_v36 = vrot.slane %v1730_v25, %v2553_v5  ;;  %s2360_s15 = smov [#allocation10]  }
 0x418   : > { %v1601_v30 = vpop.f32.mrb[45].mxu1  ;;  %p2261_p9 = pnand %p2260_p0, %p2864_p10  ;;  %s2263_s27 = sshll.u32 %s2360_s15, 4  ;;  %s2264_s27 = int_to_ptr.vmem [resolvable:$false] %s2263_s27 }
 0x419   : > { %v1731_v32 = vcombine.low %v1599_v28, %v1601_v30  ;;  %v1603_v33 = vpop.f32.mrb[46].mxu1  ;;  %s2265_s7 = scalar_lea.vmem %s2264_s27, 768  ;;  %p2266_p7 = scmp.lt.s32.totalorder %s2792_s22, %s2264_s27 }
 0x41a   : > { %v1604_v34 = vpop.f32.mrb[47].mxu1  ;;  %p2262_p3 = pneg %p2261_p9  ;;  %p2267_p13 = scmp.lt.s32.totalorder %s2265_s7, %s2259_s19 }
 0x41b   : > { %v1759_v38 = vrot.slane %v1731_v32, %v2553_v5 }
 0x41c   : > { %p2268_p2 = por %p2267_p13, %p2266_p7 }
 0x41d   : > { %v1761_v39 = vcombine.low %v1752_v36, %v1759_v38 }
 0x41e   : > { %p2269_p6 = pnand %p2268_p2, %p2262_p3 }
 0x41f   : > { %v1775_v43 = vrot.slane %v1761_v39, %v2553_v5 }
 0x421   : > { %v1776_v45 = vcombine.low %v1768_v41, %v1775_v43 }
 0x423   : > { %v1782_v47 = vadd.f32 %v1776_v45, %v2729_v40 }
 0x425   : > { %1795 = vst [vmem:[%s2732_s23 + $0x10] sm:$0xff] %v1782_v47 }
 0x426   : > { %2272 = shalt.err (!%p2269_p6)
}
 0x427   : > { %s2273_s9 = scalar_lea.hbm %s2790_s6, 384  ;;  %s2277_s10 = scalar_lea.hbm %s2842_s2, 768 }
 0x428   : > { %p2274_p12 = scmp.ne.s32.totalorder %s2790_s6, %s2273_s9  ;;  %p2278_p5 = scmp.lt.u32.totalorder %s2790_s6, %s2842_s2 }
 0x429   : > { %p2279_p11 = scmp.lt.u32.totalorder %s2277_s10, %s2273_s9  ;;  %p2281_p0 = scmp.lt.u32.totalorder %s2273_s9, %s2790_s6 }
 0x42a   : > { %p2275_p4 = pnand %p2274_p12, %p2864_p10 }
 0x42b   : > { %p2280_p1 = por %p2279_p11, %p2278_p5 }
 0x42c   : > { %p2276_p8 = pneg %p2275_p4 }
 0x42d   : > { %p2282_p9 = por %p2281_p0, %p2280_p1 }
 0x42f   : > { %p2283_p3 = pnand %p2282_p9, %p2276_p8 }
 0x431   : > { %2286 = shalt.err (!%p2283_p3)
}
 0x432   : > { %2086 = dma.vmem_to_hbm [thread:$0]  (%p2864_p10), %s2792_s22, 384, %s2790_s6, %s1822_s11  }
 0x433 PF: > { %s1868_s26 = sand.u32 1, %s2329_s12   ;;  %p2865_p7 = scmp.ne.s32.totalorder %s2854_s25, 0 }
 0x434   : > { %p2866_p13 = scmp.ge.s32.totalorder %s2349_s17, 2  ;;  %s1869_s29 = scalar_lea.sflag [#allocation7], %s1868_s26 }
 0x436   : > { %p2099_p2 = pnand %p2866_p13, %p2865_p7 }
 0x438   : > { %2320 = dma.done.wait (!%p2099_p2), %s1869_s29, 384  }
 0x439   : > { %2322 = vsyncadd (!%p2099_p2), %s1869_s29, 4294966912  ;;  %s1878_s18 = scalar_lea.sflag [#allocation12], %s1868_s26 }
 0x43a   : > { %2324 = dma.done.wait (!%p2099_p2), %s1878_s18, 16  }
 0x43b   : > { %2326 = vsyncadd (!%p2099_p2), %s1878_s18, 4294967280  ;;  %s24_s17 = sadd.s32 1, %s2349_s17   ;;  %s2867_s12 = smov %s2333_s13 }
 0x43c   : > { %p21_p6 = scmp.ge.s32.totalorder %s24_s17, 4   ;;  %s2868_s13 = smov %s2337_s14 }
 0x43d   : > { %s2869_s14 = smov %s2500_s28  ;;  %s2870_s15 = smov %s2345_s16 }
 0x43e   : > { %s2871_s16 = smov %s2873_s4  ;;  %23 = sbr.rel (!%p21_p6) target bundleno = 9 (0x9), region = 102 }
 0x445   :  { %1882 = vsyncpa [#allocation6], 1 }
 0x446   :  { %1884 = vsyncpa [#allocation6 + $0x1], 1 }
 0x447   :  { %1885 = vsyncpa [#allocation9], 1 }
 0x448   :  { %1886 = vsyncpa [#allocation7], 1 }
 0x449   :  { %1888 = vsyncpa [#allocation7 + $0x1], 1 }
 0x44a   :  { %1889 = vsyncpa [#allocation12], 1 }
 0x44b   :  { %1891 = vsyncpa [#allocation12 + $0x1], 1 }

</bundles_post_ra>
